<compile_context>
chip_gen: v6e
topology: v6e:2x2x1
jax: 0.10.0
libtpu: 0.0.40
codegen_flags: <defaults>
</compile_context>

<pallas_src>
import functools
import numpy as np
import jax
import jax.numpy as jnp
from jax.experimental import pallas as pl
from jax.experimental.pallas import tpu as pltpu

BN_EPS = 1e-5


def _round_up(x, m):
    return (x + m - 1) // m * m


# --------------------------------------------------------------------------
# Pallas kernels
# --------------------------------------------------------------------------

def _matmul_affine_kernel(*refs, relu, has_res):
    """One (tm, K) x (K, tn) bf16 matmul with f32 accumulation and a fused
    per-column affine (+ optional residual add, + optional ReLU) epilogue."""
    if has_res:
        a_ref, b_ref, s_ref, h_ref, r_ref, o_ref = refs
    else:
        a_ref, b_ref, s_ref, h_ref, o_ref = refs
        r_ref = None
    acc = jnp.dot(a_ref[...], b_ref[...], preferred_element_type=jnp.float32)
    y = acc * s_ref[...] + h_ref[...]
    if has_res:
        y = y + r_ref[...]
    if relu:
        y = jnp.maximum(y, 0.0)
    o_ref[...] = y.astype(o_ref.dtype)


def matmul_affine(a, b, scale, shift, *, relu, residual=None, n_valid=None):
    """out = maybe_relu((a @ b) * scale + shift [+ residual]).

    a:        (M, K)  activations / im2col patches (any float dtype; cast bf16)
    b:        (Kp, Np) bf16 weight, pre-padded to 128-multiples at init
    scale/shift: (1, Np) f32
    residual: optional (M, n_valid) f32, fused into the epilogue
    returns:  (M, n_valid) f32
    """
    M, K = a.shape
    Kp, Np = b.shape
    assert Kp == _round_up(K, 128)
    if n_valid is None:
        n_valid = Np

    # Tile selection: match tm to the (often tiny) real M, take the whole K as
    # a single block, and use 256-wide N tiles where the channel count allows.
    tm = min(_round_up(M, 16), 256)
    Mp = _round_up(M, tm)
    tn = 256 if Np % 256 == 0 else 128

    a_p = a.astype(jnp.bfloat16)
    if Mp != M or Kp != K:
        a_p = jnp.pad(a_p, ((0, Mp - M), (0, Kp - K)))

    in_specs = [
        pl.BlockSpec((tm, Kp), lambda i, j: (i, 0)),
        pl.BlockSpec((Kp, tn), lambda i, j: (0, j)),
        pl.BlockSpec((1, tn), lambda i, j: (0, j)),
        pl.BlockSpec((1, tn), lambda i, j: (0, j)),
    ]
    inputs = [a_p, b, scale, shift]
    has_res = residual is not None
    if has_res:
        r_p = residual.astype(jnp.float32)
        if Mp != M or Np != n_valid:
            r_p = jnp.pad(r_p, ((0, Mp - M), (0, Np - n_valid)))
        in_specs.append(pl.BlockSpec((tm, tn), lambda i, j: (i, j)))
        inputs.append(r_p)

    out = pl.pallas_call(
        functools.partial(_matmul_affine_kernel, relu=relu, has_res=has_res),
        out_shape=jax.ShapeDtypeStruct((Mp, Np), jnp.float32),
        grid_spec=pltpu.PrefetchScalarGridSpec(
            num_scalar_prefetch=0,
            grid=(Mp // tm, Np // tn),
            in_specs=in_specs,
            out_specs=pl.BlockSpec((tm, tn), lambda i, j: (i, j)),
        ),
        compiler_params=pltpu.CompilerParams(
            dimension_semantics=("parallel", "parallel"),
            vmem_limit_bytes=32 * 1024 * 1024),
    )(*inputs)
    return out[:M, :n_valid]


def _maxpool_kernel(p_ref, o_ref):
    # p_ref: (kk, bm, C) window-patches; reduce max over the leading window axis.
    y = p_ref[0]
    for i in range(1, p_ref.shape[0]):
        y = jnp.maximum(y, p_ref[i])
    o_ref[...] = y


def maxpool2d(x, ksize=3, stride=2, pad=1):
    """MaxPool2d(ksize, stride, pad) on NHWC input (padding value = -inf)."""
    N, H, W, C = x.shape
    Ho = (H + 2 * pad - ksize) // stride + 1
    Wo = (W + 2 * pad - ksize) // stride + 1
    xp = jnp.pad(x, ((0, 0), (pad, pad), (pad, pad), (0, 0)),
                 constant_values=-jnp.inf)
    cols = []
    for a in range(ksize):
        for b in range(ksize):
            cols.append(xp[:, a:a + (Ho - 1) * stride + 1:stride,
                             b:b + (Wo - 1) * stride + 1:stride, :])
    kk = ksize * ksize
    M = N * Ho * Wo
    patches = jnp.stack(cols, axis=0).reshape(kk, M, C)

    bm = min(_round_up(M, 8), 512)
    Mp = _round_up(M, bm)
    if Mp != M:
        patches = jnp.pad(patches, ((0, 0), (0, Mp - M), (0, 0)))

    out = pl.pallas_call(
        _maxpool_kernel,
        out_shape=jax.ShapeDtypeStruct((Mp, C), x.dtype),
        grid_spec=pltpu.PrefetchScalarGridSpec(
            num_scalar_prefetch=0,
            grid=(Mp // bm,),
            in_specs=[pl.BlockSpec((kk, bm, C), lambda i: (0, i, 0))],
            out_specs=pl.BlockSpec((bm, C), lambda i: (i, 0)),
        ),
        compiler_params=pltpu.CompilerParams(
            dimension_semantics=("parallel",),
            vmem_limit_bytes=32 * 1024 * 1024),
    )(patches)
    return out[:M].reshape(N, Ho, Wo, C)


# --------------------------------------------------------------------------
# Conv / deconv built on the Pallas matmul kernel (im2col glue in plain JAX)
# --------------------------------------------------------------------------

def _im2col(x, kh, kw, stride, pad):
    N, H, W, C = x.shape
    Ho = (H + 2 * pad - kh) // stride + 1
    Wo = (W + 2 * pad - kw) // stride + 1
    if pad:
        x = jnp.pad(x, ((0, 0), (pad, pad), (pad, pad), (0, 0)))
    cols = []
    for a in range(kh):
        for b in range(kw):
            cols.append(x[:, a:a + (Ho - 1) * stride + 1:stride,
                            b:b + (Wo - 1) * stride + 1:stride, :])
    if len(cols) == 1:
        patches = cols[0]
    else:
        patches = jnp.stack(cols, axis=3)            # (N, Ho, Wo, kh*kw, C)
    return patches.reshape(N * Ho * Wo, kh * kw * C), (N, Ho, Wo)


def conv2d(x, cp, *, stride, pad, relu, residual=None):
    """Conv + folded BN (+ optional fused residual add) (+ optional ReLU)."""
    patches, (N, Ho, Wo) = _im2col(x.astype(jnp.bfloat16),
                                   cp['kh'], cp['kw'], stride, pad)
    res2d = None
    if residual is not None:
        res2d = residual.reshape(N * Ho * Wo, cp['cout'])
    out = matmul_affine(patches, cp['w'], cp['scale'], cp['shift'],
                        relu=relu, residual=res2d, n_valid=cp['cout'])
    return out.reshape(N, Ho, Wo, cp['cout'])


def deconv2d(x, dp, *, relu):
    """ConvTranspose2d(k=4, s=2, p=1) + folded BN (+ReLU) via 4 sub-pixel
    phase convs (2x2 taps each); no multiply-by-zero work."""
    N, H, W, C = x.shape
    cout = dp['cout']
    xb = x.astype(jnp.bfloat16)
    rows = []
    for py in (0, 1):
        cols_out = []
        for px in (0, 1):
            pt, pb = (1, 0) if py == 0 else (0, 1)
            plft, prgt = (1, 0) if px == 0 else (0, 1)
            xp = jnp.pad(xb, ((0, 0), (pt, pb), (plft, prgt), (0, 0)))
            taps = [xp[:, dy:dy + H, dx:dx + W, :]
                    for dy in (0, 1) for dx in (0, 1)]
            patches = jnp.stack(taps, axis=3).reshape(N * H * W, 4 * C)
            o = matmul_affine(patches, dp['wp'][py][px], dp['scale'],
                              dp['shift'], relu=relu, n_valid=cout)
            cols_out.append(o.reshape(N, H, W, cout))
        rows.append(jnp.stack(cols_out, axis=3))     # (N,H,W,2,cout), axis3=px
    y = jnp.stack(rows, axis=2)                      # (N,H,2,W,2,cout), axis2=py
    return y.reshape(N, 2 * H, 2 * W, cout)


# --------------------------------------------------------------------------
# Parameter packing (done ONCE at init: reshape, pad to 128-multiples, bf16)
# --------------------------------------------------------------------------

def _pack_affine(scale, shift, cout):
    Np = _round_up(cout, 128)
    s = jnp.pad(scale.astype(jnp.float32), (0, Np - cout)).reshape(1, Np)
    h = jnp.pad(shift.astype(jnp.float32), (0, Np - cout)).reshape(1, Np)
    return s, h


def _pack_conv(w_hwio, scale, shift):
    kh, kw, cin, cout = w_hwio.shape
    K = kh * kw * cin
    Kp, Np = _round_up(K, 128), _round_up(cout, 128)
    wm = jnp.pad(w_hwio.reshape(K, cout),
                 ((0, Kp - K), (0, Np - cout))).astype(jnp.bfloat16)
    s, h = _pack_affine(scale, shift, cout)
    return {'w': wm, 'scale': s, 'shift': h, 'kh': kh, 'kw': kw, 'cout': cout}


def _pack_deconv(w_hwio, scale, shift):
    # w_hwio: (4, 4, cin, cout) in the forward-conv (dilated-input) layout.
    _, _, cin, cout = w_hwio.shape
    K = 4 * cin
    Kp, Np = _round_up(K, 128), _round_up(cout, 128)
    s, h = _pack_affine(scale, shift, cout)
    wp = []
    for py in (0, 1):
        row = []
        for px in (0, 1):
            w_phase = w_hwio[py::2, px::2]                    # (2,2,cin,cout)
            wm = jnp.pad(w_phase.reshape(K, cout),
                         ((0, Kp - K), (0, Np - cout))).astype(jnp.bfloat16)
            row.append(wm)
        wp.append(row)
    return {'wp': wp, 'scale': s, 'shift': h, 'cout': cout}


def init_params(key, num_keypoints=50):
    keys = iter(jax.random.split(key, 512))

    def conv_w(kh, kw, cin, cout):
        std = 1.0 / np.sqrt(kh * kw * cin)
        return std * jax.random.normal(next(keys), (kh, kw, cin, cout), jnp.float32)

    def bn(c):  # eval-mode BatchNorm folded into (scale, shift)
        gamma = 1.0 + 0.1 * jax.random.normal(next(keys), (c,), jnp.float32)
        beta = 0.1 * jax.random.normal(next(keys), (c,), jnp.float32)
        mean = 0.1 * jax.random.normal(next(keys), (c,), jnp.float32)
        var = 1.0 + 0.1 * jax.random.uniform(next(keys), (c,), jnp.float32)
        scale = gamma / jnp.sqrt(var + BN_EPS)
        shift = beta - mean * scale
        return scale, shift

    def conv_bn(kh, kw, cin, cout):
        return _pack_conv(conv_w(kh, kw, cin, cout), *bn(cout))

    def basic_block(cin, cout, stride):
        p = {'stride': stride,
             'conv1': conv_bn(3, 3, cin, cout),
             'conv2': conv_bn(3, 3, cout, cout)}
        if stride != 1 or cin != cout:
            p['convd'] = conv_bn(1, 1, cin, cout)
        return p

    def deconv_bn(cin, cout):
        return _pack_deconv(conv_w(4, 4, cin, cout), *bn(cout))

    nk = num_keypoints
    final_w = conv_w(1, 1, 256, nk)
    final_b = 0.01 * jax.random.normal(next(keys), (nk,), jnp.float32)
    return {
        'conv1': conv_bn(7, 7, 3, 64),
        'layer1': [basic_block(64, 64, 1), basic_block(64, 64, 1)],
        'layer2': [basic_block(64, 128, 2), basic_block(128, 128, 1)],
        'layer3': [basic_block(128, 256, 2), basic_block(256, 256, 1)],
        'layer4': [basic_block(256, 512, 2), basic_block(512, 512, 1)],
        'head': [deconv_bn(512, 256), deconv_bn(256, 256), deconv_bn(256, 256)],
        'final': _pack_conv(final_w, jnp.ones((nk,), jnp.float32), final_b),
    }


# --------------------------------------------------------------------------
# Forward pass
# --------------------------------------------------------------------------

def run_basic_block(x, p):
    out = conv2d(x, p['conv1'], stride=p['stride'], pad=1, relu=True)
    if 'convd' in p:
        identity = conv2d(x, p['convd'], stride=p['stride'], pad=0, relu=False)
    else:
        identity = x
    # Residual add + ReLU fused into the second conv's epilogue.
    return conv2d(out, p['conv2'], stride=1, pad=1, relu=True, residual=identity)


def keypoint_heatmap_net(params, x_nchw):
    x = jnp.transpose(x_nchw, (0, 2, 3, 1)).astype(jnp.float32)   # NCHW -> NHWC
    # ResNet-18 stem
    x = conv2d(x, params['conv1'], stride=2, pad=3, relu=True)
    x = maxpool2d(x, 3, 2, 1)
    # ResNet-18 stages
    for layer in ('layer1', 'layer2', 'layer3', 'layer4'):
        for blk in params[layer]:
            x = run_basic_block(x, blk)
    # HeatmapHead: 3x (deconv k4 s2 p1 -> BN -> ReLU)
    for d in params['head']:
        x = deconv2d(x, d, relu=True)
    # final 1x1 conv with bias (no BN / ReLU)
    x = conv2d(x, params['final'], stride=1, pad=0, relu=False)
    return jnp.transpose(x, (0, 3, 1, 2))                          # NHWC -> NCHW


if __name__ == "__main__":
    key = jax.random.PRNGKey(0)
    pkey, xkey = jax.random.split(key)
    params = init_params(pkey, num_keypoints=50)

    # NCHW image input, small spatial size (64 -> backbone /32 = 2 -> head x8 = 16)
    x = jax.random.normal(xkey, (2, 3, 64, 64), jnp.float32)

    out = keypoint_heatmap_net(params, x)
    out = jax.block_until_ready(out)

    assert out.shape == (2, 50, 16, 16), out.shape
    assert bool(jnp.all(jnp.isfinite(out)))
    print("KERNEL_OK")
</pallas_src>

<mosaic_0001>
module attributes {stable_mosaic.version = 11 : i64} {
  func.func @_matmul_affine_kernel(%arg0: i32, %arg1: i32, %arg2: memref<256x256xbf16, #tpu.memory_space<vmem>>, %arg3: memref<256x128xbf16, #tpu.memory_space<vmem>>, %arg4: memref<1x128xf32, #tpu.memory_space<vmem>>, %arg5: memref<1x128xf32, #tpu.memory_space<vmem>>, %arg6: memref<256x128xf32, #tpu.memory_space<vmem>>) attributes {dimension_semantics = [#tpu.dimension_semantics<parallel>, #tpu.dimension_semantics<parallel>], iteration_bounds = array<i64: 8, 1>, scalar_prefetch = 0 : i64, scratch_operands = 0 : i64, tpu.core_type = #tpu.core_type<tc>, window_params = [{transform_indices = @transform_0, window_bounds = array<i64: 256, 256>}, {transform_indices = @transform_1, window_bounds = array<i64: 256, 128>}, {transform_indices = @transform_2, window_bounds = array<i64: 1, 128>}, {transform_indices = @transform_3, window_bounds = array<i64: 1, 128>}, {transform_indices = @transform_4, window_bounds = array<i64: 256, 128>}]} {
    %c0 = arith.constant 0 : index
    %c0_0 = arith.constant 0 : index
    %0 = vector.load %arg2[%c0, %c0_0] : memref<256x256xbf16, #tpu.memory_space<vmem>>, vector<256x256xbf16>
    %c0_1 = arith.constant 0 : index
    %c0_2 = arith.constant 0 : index
    %1 = vector.load %arg3[%c0_1, %c0_2] : memref<256x128xbf16, #tpu.memory_space<vmem>>, vector<256x128xbf16>
    %cst = arith.constant dense<0.000000e+00> : vector<256x128xf32>
    %2 = tpu.matmul %0, %1, %cst {dimension_numbers = #tpu.dot_dimension_numbers<[1], [0], [0], [1], [0, 0, 1, 1], [], []>} : vector<256x256xbf16>, vector<256x128xbf16>, vector<256x128xf32> -> vector<256x128xf32>
    %c0_3 = arith.constant 0 : index
    %c0_4 = arith.constant 0 : index
    %3 = vector.load %arg4[%c0_3, %c0_4] : memref<1x128xf32, #tpu.memory_space<vmem>>, vector<1x128xf32>
    %4 = vector.broadcast %3 : vector<1x128xf32> to vector<256x128xf32>
    %5 = arith.mulf %2, %4 : vector<256x128xf32>
    %c0_5 = arith.constant 0 : index
    %c0_6 = arith.constant 0 : index
    %6 = vector.load %arg5[%c0_5, %c0_6] : memref<1x128xf32, #tpu.memory_space<vmem>>, vector<1x128xf32>
    %7 = vector.broadcast %6 : vector<1x128xf32> to vector<256x128xf32>
    %8 = arith.addf %5, %7 : vector<256x128xf32>
    %cst_7 = arith.constant 0.000000e+00 : f32
    %9 = vector.broadcast %cst_7 : f32 to vector<256x128xf32>
    %10 = arith.maximumf %8, %9 : vector<256x128xf32>
    %c0_8 = arith.constant 0 : index
    %c0_9 = arith.constant 0 : index
    %11 = vector.load %arg6[%c0_8, %c0_9] : memref<256x128xf32, #tpu.memory_space<vmem>>, vector<256x128xf32>
    tpu.vector_store %arg6[%c0_8, %c0_9], %10 {strides = array<i32>} : memref<256x128xf32, #tpu.memory_space<vmem>>, vector<256x128xf32>,
    return
  }
  func.func @transform_0(%arg0: i32, %arg1: i32) -> (i32, i32) {
    %c0_i32 = arith.constant 0 : i32
    %c0_i32_0 = arith.constant 0 : i32
    return %arg0, %c0_i32 : i32, i32
  }
  func.func @transform_1(%arg0: i32, %arg1: i32) -> (i32, i32) {
    %c0_i32 = arith.constant 0 : i32
    %c0_i32_0 = arith.constant 0 : i32
    return %c0_i32, %arg1 : i32, i32
  }
  func.func @transform_2(%arg0: i32, %arg1: i32) -> (i32, i32) {
    %c0_i32 = arith.constant 0 : i32
    %c0_i32_0 = arith.constant 0 : i32
    return %c0_i32, %arg1 : i32, i32
  }
  func.func @transform_3(%arg0: i32, %arg1: i32) -> (i32, i32) {
    %c0_i32 = arith.constant 0 : i32
    %c0_i32_0 = arith.constant 0 : i32
    return %c0_i32, %arg1 : i32, i32
  }
  func.func @transform_4(%arg0: i32, %arg1: i32) -> (i32, i32) {
    %c0_i32 = arith.constant 0 : i32
    return %arg0, %arg1 : i32, i32
  }
}

</mosaic_0001>

<bundles_post_ra>
// kernel: tpu_custom_call.1
= control target key start
LH: loop header
LB: loop body
LE: loop exit
PB: predicated region body
PF: predicated region fallthrough
CT: control target
= control target key end

     0   :  { %s1885_s0 = inlined_call_operand.hbm [shape: bf16[2048,256], index: 0, kind: input, shape index: {}]   ;;  %s1886_s1 = inlined_call_operand.hbm [shape: bf16[256,128], index: 1, kind: input, shape index: {}]   ;;  %s1887_s2 = inlined_call_operand.vmem [shape: f32[1,128], index: 2, kind: input, shape index: {}]   ;;  %s1888_s3 = inlined_call_operand.vmem [shape: f32[1,128], index: 3, kind: input, shape index: {}]   ;;  %s1889_s4 = inlined_call_operand.hbm [shape: f32[2048,128], index: 4, kind: output, shape index: {}]  }
   0x1   :  { %1891 = sst [smem:[#allocation11_spill]] %s1886_s1 }
   0x2   :  { %9 = vsyncpa [#allocation3], 0 }
   0x3   :  { %11 = vsyncpa [#allocation3 + $0x1], 0 }
   0x4   :  { %12 = vsyncpa [#allocation6], 0 }
   0x5   :  { %13 = vsyncpa [#allocation4], 0 }
   0x6   :  { %15 = vsyncpa [#allocation4 + $0x1], 0  ;;  %s1559_s15 = smov 0   ;;  %s1561_s16 = smov 0  }
   0x7   :  { %s1563_s17 = smov 0   ;;  %s1565_s18 = smov 0  }
   0x8   :  { %s1567_s19 = smov 0   ;;  %s1569_s20 = smov 0  }
   0x9 LB: > { %s1041_s21 = sadd.s32 4294967295, %s1523_s20   ;;  %s1042_s22 = sadd.s32 4294967294, %s1523_s20   ;;  %s1523_s20 = sphi %s1569_s20, %s21_s20   ;;  %s1519_s19 = sphi %s1567_s19, %s1908_s19   ;;  %s1515_s18 = sphi %s1565_s18, %s1907_s18   ;;  %s1511_s17 = sphi %s1563_s17, %s1906_s17   ;;  %s1507_s16 = sphi %s1561_s16, %s1905_s16   ;;  %s1503_s15 = sphi %s1559_s15, %s1904_s15  }
   0xa   : > { %p53_p0 = scmp.ne.s32.totalorder %s1507_s16, %s1503_s15  ;;  %p1593_p1 = scmp.eq.s32.totalorder %s1041_s21, 0 }
   0xb   : > { %p1597_p2 = scmp.eq.s32.totalorder %s1041_s21, 7  ;;  %p163_p3 = scmp.eq.s32.totalorder %s1042_s22, 7 }
   0xc   : > { %p1603_p4 = por %p1593_p1, %p53_p0  ;;  %p1043_p5 = scmp.ge.s32.totalorder %s1523_s20, 1 }
   0xd   : > { %p1608_p6 = por %p163_p3, %p53_p0  ;;  %p170_p7 = scmp.lt.s32.totalorder %s1523_s20, 9 }
   0xe   : > { %s1525_s28 = smov [#allocation5]   ;;  %s33_s5 = sadd.s32 1, %s1519_s19 }
   0xf   : > { %s1895_s26 = scalar_select %p1608_p6, 1, 0 }
  0x10   : > { %p1613_p8 = pnand %p1043_p5, %p170_p7  ;;  %s184_s29 = sshll.u32 %s1525_s28, 4  ;;  %s185_s29 = int_to_ptr.vmem [resolvable:$true] %s184_s29 }
  0x11   : > { %s1396_s6 = scalar_lea.vmem %s185_s29, 2048  ;;  %p1404_p3 = scmp.lt.s32.totalorder %s185_s29, %s185_s29 }
  0x12   : > { %p1250_p9 = pneg %p1613_p8  ;;  %p1397_p12 = scmp.ne.s32.totalorder %s185_s29, %s1396_s6 }
  0x13   : > { %p1405_p5 = scmp.lt.s32.totalorder %s1396_s6, %s1396_s6 }
  0x14   : > { %p1621_p10 = pnand %p1250_p9, %p1593_p1 }
  0x15   : > { %p1406_p7 = por %p1405_p5, %p1404_p3 }
  0x16   : > { %p1387_p11 = pneg %p1621_p10 }
  0x18   : > { %p1399_p13 = pnand %p1397_p12, %p1387_p11 }
  0x1a   : > { %p1400_p0 = pneg %p1399_p13 }
  0x1c   : > { %p1407_p6 = pnand %p1406_p7, %p1400_p0 }
  0x1e   : > { %1410 = shalt.err (!%p1407_p6)
}
  0x1f   : > { %s1526_s7 = smov 64   ;;  %s1527_s8 = smov 4  }
  0x20   : > { %s1898_s1 = sld [smem:[#allocation11_spill]]  ;;  %p35_p9 = scmp.ge.s32.totalorder %s33_s5, 8 }
  0x21   : > { %s40_s11 = sadd.s32 1, %s1511_s17  ;;  %p47_p6 = scmp.ne.s32.totalorder %s1511_s17, %s1507_s16 }
  0x22   : > { %p48_p11 = scmp.eq.s32.totalorder %s1523_s20, 0  ;;  %s1910_s5 = smov (%p35_p9, %s33_s5), 0 }
  0x23   : > { %p1645_p13 = por %p1597_p2, %p47_p6  ;;  %s37_s14 = ssub.s32 %s1519_s19, %s1910_s5 }
  0x24   : > { %p1639_p12 = por %p48_p11, %p47_p6  ;;  %p1263_p0 = scmp.lt.s32.totalorder %s1523_s20, 8 }
  0x25   : > { %s1900_s13 = scalar_select %p1645_p13, 1, 0 }
  0x26   : > { %1253 = dma.hbm_to_vmem [thread:$0]  (!%p1621_p10), %s1898_s1, 2048, %s185_s29, [#allocation6], %s1526_s7, %s1526_s7, %s1527_s8  }
  0x27   : > { %p38_p10 = scmp.eq.s32.totalorder %s37_s14, 0  ;;  %s210_s21 = sand.u32 1, %s1511_s17  }
  0x28   : > { %s1048_s22 = sshll.u32 %s210_s21, 8  ;;  %s1112_s29 = sshll.u32 %s1519_s19, 12 }
  0x29   : > { %s1654_s28 = scalar_select %p38_p10, %s1511_s17, %s40_s11  }
  0x2a   : > { %s221_s7 = scalar_lea.hbm %s1885_s0, %s1112_s29  ;;  %s214_s8 = scalar_lea.vmem [#allocation2], %s1048_s22 }
  0x2b   : > { %s222_s9 = sshll.u32 %s214_s8, 4  ;;  %p1662_p2 = pnand %p1263_p0, %p1639_p12  ;;  %s223_s9 = int_to_ptr.vmem [resolvable:$true] %s222_s9 }
  0x2c   : > { %s211_s10 = scalar_lea.sflag [#allocation3], %s210_s21  ;;  %s1424_s14 = scalar_lea.vmem %s223_s9, 4096 }
  0x2d   : > { %p1413_p3 = pneg %p1662_p2  ;;  %p1425_p5 = scmp.ne.s32.totalorder %s223_s9, %s1424_s14 }
  0x2e   : > { %s1528_s11 = smov [#allocation2]  }
  0x2f   : > { %p1427_p7 = pnand %p1425_p5, %p1413_p3  ;;  %s1429_s1 = sshll.u32 %s1528_s11, 4  ;;  %s1430_s1 = int_to_ptr.vmem [resolvable:$false] %s1429_s1 }
  0x30   : > { %s1431_s29 = scalar_lea.vmem %s1430_s1, 8192  ;;  %p1432_p6 = scmp.lt.s32.totalorder %s223_s9, %s1430_s1 }
  0x31   : > { %p1428_p9 = pneg %p1427_p7  ;;  %p1433_p11 = scmp.lt.s32.totalorder %s1431_s29, %s1424_s14 }
  0x33   : > { %p1434_p10 = por %p1433_p11, %p1432_p6 }
  0x35   : > { %p1435_p13 = pnand %p1434_p10, %p1428_p9 }
  0x37   : > { %1438 = shalt.err (!%p1435_p13)
}
  0x38   : > { %s1529_s12 = smov 128   ;;  %s1530_s22 = smov 8  }
  0x39   : > { %1257 = dma.hbm_to_vmem [thread:$0]  (!%p1662_p2), %s221_s7, 4096, %s223_s9, %s211_s10, %s1529_s12, %s1529_s12, %s1530_s22  }
  0x3a   : > { %234 = sbr.rel (%p1613_p8) target bundleno = 376 (0x178), region = 36  ;;  %s1673_s21 = sand.u32 (!%p1613_p8), 1, %s1507_s16  }
  0x3b   : > { %s1053_s1 = sshll.u32 (!%p1613_p8), %s1673_s21, 8  ;;  %s237_s30 = scalar_lea.sflag (!%p1613_p8), [#allocation3], %s1673_s21 }
  0x3c   : > { %s1679_s6 = scalar_lea.vmem (!%p1613_p8), [#allocation2], %s1053_s1 }
  0x3f   : > { %1490 = dma.done.wait (%p1603_p4), %s237_s30, 4096  }
  0x40   : > { %1492 = vsyncadd (%p1603_p4), %s237_s30, 4294963200 }
  0x41   : > { %1494 = dma.done.wait (%p1593_p1), [#allocation6], 2048  }
  0x42   : > { %1496 = vsyncadd (%p1593_p1), [#allocation6], 4294965248  ;;  %v1321_v0 = vld [vmem:[#allocation5 + $0x78] sm:$0xff]   ;;  %v1323_v2 = vld [vmem:[#allocation5 + $0x70] sm:$0xff]   ;;  %s1739_s8 = scalar_lea.vmem [#allocation7], %s1053_s1  ;;  %s1113_s9 = sshll.u32 %s1515_s18, 12 }
  0x43   : > { %v1322_v1 = vld [vmem:[#allocation5 + $0x38] sm:$0xff]   ;;  %1114 = vmatprep.subr.bf16.mxu0 %v1321_v0  ;;  %1226 = vmatprep.subr.bf16.mxu1 %v1321_v0  ;;  %v1324_v3 = vld [vmem:[#allocation5 + $0x30] sm:$0xff]   ;;  %v1325_v4 = vld [vmem:[#allocation5 + $0x68] sm:$0xff]   ;;  %s922_s24 = sshll.u32 %s1739_s8, 4  ;;  %s1834_s11 = scalar_lea.hbm %s1889_s4, %s1113_s9  ;;  %s1836_s24 = int_to_ptr.vmem [resolvable:$true] %s922_s24 }
  0x44   : > { %1115 = vmatpush3.bf16.msra.mxu0 %v1322_v1  ;;  %1234 = vmatpush3.bf16.msra.mxu1 %v1322_v1  ;;  %v1326_v5 = vld [vmem:[#allocation5 + $0x28] sm:$0xff]   ;;  %v1327_v6 = vld [vmem:[#allocation5 + $0x60] sm:$0xff]   ;;  %v1329_v8 = vld [vmem:[#allocation5 + $0x58] sm:$0xff]   ;;  %s908_s18 = scalar_lea.sflag [#allocation4], %s1673_s21  ;;  %s1439_s29 = scalar_lea.vmem %s1836_s24, 4096 }
  0x45   : > { %1116 = vmatprep.subr.bf16.mxu0 %v1323_v2  ;;  %1227 = vmatprep.subr.bf16.mxu1 %v1323_v2  ;;  %v1328_v7 = vld [vmem:[#allocation5 + $0x20] sm:$0xff]   ;;  %v1330_v9 = vld [vmem:[#allocation5 + $0x18] sm:$0xff]   ;;  %v1331_v10 = vld [vmem:[#allocation5 + $0x50] sm:$0xff]   ;;  %p1440_p1 = scmp.ne.s32.totalorder %s1836_s24, %s1439_s29  ;;  %p1902_p4 = scmp.ne.s32.totalorder %s1900_s13, 0 }
  0x46   : > { %v1339_v11 = vld [vmem:[%s1679_s6 + $0x4] ss:$8 sps:$4 sm:$0xff]   ;;  %v1332_v13 = vld [vmem:[#allocation5 + $0x10] sm:$0xff]   ;;  %v1337_v18 = vld [vmem:[%s1679_s6] ss:$8 sps:$4 sm:$0xff]   ;;  %s1531_s12 = smov [#allocation7]  }
  0x47   : > { %v1342_v12 = vld [vmem:[%s1679_s6 + $0x84] ss:$8 sps:$4 sm:$0xff]   ;;  %636 = vmatprep.mubr.bf16.mxu0 %v1339_v11  ;;  %v1340_v19 = vld [vmem:[%s1679_s6 + $0x80] ss:$8 sps:$4 sm:$0xff]   ;;  %v1343_v20 = vld [vmem:[%s1679_s6 + $0x14] ss:$8 sps:$4 sm:$0xff]   ;;  %p1441_p8 = pnand %p1440_p1, %p1902_p4 }
  0x48   : > { %1117 = vmatpush3.bf16.msra.mxu0 %v1324_v3  ;;  %1235 = vmatpush3.bf16.msra.mxu1 %v1324_v3  ;;  %v1333_v14 = vld [vmem:[#allocation5 + $0x48] sm:$0xff]   ;;  %v1335_v16 = vld [vmem:[#allocation5 + $0x40] sm:$0xff]   ;;  %v1345_v21 = vld [vmem:[%s1679_s6 + $0x94] ss:$8 sps:$4 sm:$0xff]   ;;  %s1443_s22 = sshll.u32 %s1531_s12, 4  ;;  %s1444_s22 = int_to_ptr.vmem [resolvable:$false] %s1443_s22 }
  0x49   : > { %1118 = vmatprep.subr.bf16.mxu0 %v1325_v4  ;;  %1228 = vmatprep.subr.bf16.mxu1 %v1325_v4  ;;  %v1334_v15 = vld [vmem:[#allocation5 + $0x8] sm:$0xff]   ;;  %v1336_v17 = vld [vmem:[#allocation5] sm:$0xff]   ;;  %v1347_v22 = vld [vmem:[%s1679_s6 + $0x10] ss:$8 sps:$4 sm:$0xff]   ;;  %p1442_p12 = pneg %p1441_p8  ;;  %s1445_s1 = scalar_lea.vmem %s1444_s22, 8192 }
  0x4a   : > { %700 = vmatprep.mubr.bf16.mxu1 %v1342_v12  ;;  %v1348_v23 = vld [vmem:[%s1679_s6 + $0x90] ss:$8 sps:$4 sm:$0xff]   ;;  %v1349_v24 = vld [vmem:[%s1679_s6 + $0x24] ss:$8 sps:$4 sm:$0xff]   ;;  %v1353_v26 = vld [vmem:[%s1679_s6 + $0x20] ss:$8 sps:$4 sm:$0xff]   ;;  %p1446_p13 = scmp.lt.s32.totalorder %s1836_s24, %s1444_s22  ;;  %p1447_p0 = scmp.lt.s32.totalorder %s1445_s1, %s1439_s29 }
  0x4b   : > { %v1351_v25 = vld [vmem:[%s1679_s6 + $0xa4] ss:$8 sps:$4 sm:$0xff]   ;;  %v1354_v27 = vld [vmem:[%s1679_s6 + $0xa0] ss:$8 sps:$4 sm:$0xff]   ;;  %v1355_v28 = vld [vmem:[%s1679_s6 + $0x34] ss:$8 sps:$4 sm:$0xff]  }
  0x4c   : > { %1119 = vmatpush3.bf16.msra.mxu0 %v1326_v5  ;;  %1236 = vmatpush3.bf16.msra.mxu1 %v1326_v5  ;;  %v1357_v29 = vld [vmem:[%s1679_s6 + $0xb4] ss:$8 sps:$4 sm:$0xff]   ;;  %v1359_v30 = vld [vmem:[%s1679_s6 + $0x30] ss:$8 sps:$4 sm:$0xff]   ;;  %v1361_v32 = vld [vmem:[%s1679_s6 + $0x44] ss:$8 sps:$4 sm:$0xff]   ;;  %p1448_p2 = por %p1447_p0, %p1446_p13 }
  0x4d   : > { %1120 = vmatprep.subr.bf16.mxu0 %v1327_v6  ;;  %1229 = vmatprep.subr.bf16.mxu1 %v1327_v6  ;;  %v1360_v31 = vld [vmem:[%s1679_s6 + $0xb0] ss:$8 sps:$4 sm:$0xff]   ;;  %v1363_v33 = vld [vmem:[%s1679_s6 + $0xc4] ss:$8 sps:$4 sm:$0xff]   ;;  %v1365_v34 = vld [vmem:[%s1679_s6 + $0x40] ss:$8 sps:$4 sm:$0xff]  }
  0x4e   : > { %v1366_v35 = vld [vmem:[%s1679_s6 + $0xc0] ss:$8 sps:$4 sm:$0xff]   ;;  %v1367_v36 = vld [vmem:[%s1679_s6 + $0x54] ss:$8 sps:$4 sm:$0xff]   ;;  %v1371_v38 = vld [vmem:[%s1679_s6 + $0x50] ss:$8 sps:$4 sm:$0xff]   ;;  %p1449_p3 = pnand %p1448_p2, %p1442_p12 }
  0x4f   : > { %v1369_v37 = vld [vmem:[%s1679_s6 + $0xd4] ss:$8 sps:$4 sm:$0xff]   ;;  %v1372_v39 = vld [vmem:[%s1679_s6 + $0xd0] ss:$8 sps:$4 sm:$0xff]   ;;  %v1373_v40 = vld [vmem:[%s1679_s6 + $0x64] ss:$8 sps:$4 sm:$0xff]  }
  0x50   : > { %1121 = vmatpush3.bf16.msra.mxu0 %v1328_v7  ;;  %1237 = vmatpush3.bf16.msra.mxu1 %v1328_v7  ;;  %v1375_v41 = vld [vmem:[%s1679_s6 + $0xe4] ss:$8 sps:$4 sm:$0xff]   ;;  %v1377_v42 = vld [vmem:[%s1679_s6 + $0x60] ss:$8 sps:$4 sm:$0xff]   ;;  %v1379_v44 = vld [vmem:[%s1679_s6 + $0x74] ss:$8 sps:$4 sm:$0xff]  }
  0x51   : > { %1122 = vmatprep.subr.bf16.mxu0 %v1329_v8  ;;  %1230 = vmatprep.subr.bf16.mxu1 %v1329_v8  ;;  %v1378_v43 = vld [vmem:[%s1679_s6 + $0xe0] ss:$8 sps:$4 sm:$0xff]   ;;  %v1381_v45 = vld [vmem:[%s1679_s6 + $0xf4] ss:$8 sps:$4 sm:$0xff]   ;;  %v1383_v46 = vld [vmem:[%s1679_s6 + $0x70] ss:$8 sps:$4 sm:$0xff]  }
  0x52   : > { %v1384_v47 = vld [vmem:[%s1679_s6 + $0xf0] ss:$8 sps:$4 sm:$0xff]   ;;  %v1724_v51 = vld [vmem:[%s1887_s2] ss:$0 sm:$0xff] }
  0x53   : > { %v1729_v55 = vld [vmem:[%s1888_s3] ss:$0 sm:$0xff] }
  0x54   : > { %1123 = vmatpush3.bf16.msra.mxu0 %v1330_v9  ;;  %1238 = vmatpush3.bf16.msra.mxu1 %v1330_v9 }
  0x55   : > { %1124 = vmatprep.subr.bf16.mxu0 %v1331_v10  ;;  %1231 = vmatprep.subr.bf16.mxu1 %v1331_v10 }
  0x58   : > { %1125 = vmatpush3.bf16.msra.mxu0 %v1332_v13  ;;  %1239 = vmatpush3.bf16.msra.mxu1 %v1332_v13 }
  0x59   : > { %1126 = vmatprep.subr.bf16.mxu0 %v1333_v14  ;;  %1232 = vmatprep.subr.bf16.mxu1 %v1333_v14 }
  0x5c   : > { %1127 = vmatpush3.bf16.msra.mxu0 %v1334_v15  ;;  %1240 = vmatpush3.bf16.msra.mxu1 %v1334_v15 }
  0x5d   : > { %1128 = vmatprep.subr.bf16.mxu0 %v1335_v16  ;;  %1233 = vmatprep.subr.bf16.mxu1 %v1335_v16 }
  0x60   : > { %1129 = vmatpush3.bf16.msra.mxu0 %v1336_v17  ;;  %1241 = vmatpush3.bf16.msra.mxu1 %v1336_v17 }
  0x63   : > { %637 = vmatmul.mubr.bf16.vlgmr.msra.gmra.mxu0 %v1337_v18  ;;  %701 = vmatmul.mubr.bf16.vlgmr.msra.gmra.mxu1 %v1340_v19 }
  0x64   : > { %644 = vmatprep.mubr.bf16.mxu0 %v1343_v20  ;;  %708 = vmatprep.mubr.bf16.mxu1 %v1345_v21 }
  0x6b   : > { %645 = vmatmul.mubr.bf16.gmra.mxu0 %v1347_v22  ;;  %709 = vmatmul.mubr.bf16.gmra.mxu1 %v1348_v23 }
  0x6c   : > { %652 = vmatprep.mubr.bf16.mxu0 %v1349_v24  ;;  %716 = vmatprep.mubr.bf16.mxu1 %v1351_v25 }
  0x73   : > { %653 = vmatmul.mubr.bf16.gmra.mxu0 %v1353_v26  ;;  %717 = vmatmul.mubr.bf16.gmra.mxu1 %v1354_v27 }
  0x74   : > { %660 = vmatprep.mubr.bf16.mxu0 %v1355_v28  ;;  %724 = vmatprep.mubr.bf16.mxu1 %v1357_v29 }
  0x7b   : > { %661 = vmatmul.mubr.bf16.gmra.mxu0 %v1359_v30  ;;  %725 = vmatmul.mubr.bf16.gmra.mxu1 %v1360_v31 }
  0x7c   : > { %668 = vmatprep.mubr.bf16.mxu0 %v1361_v32  ;;  %732 = vmatprep.mubr.bf16.mxu1 %v1363_v33 }
  0x83   : > { %669 = vmatmul.mubr.bf16.gmra.mxu0 %v1365_v34  ;;  %733 = vmatmul.mubr.bf16.gmra.mxu1 %v1366_v35 }
  0x84   : > { %676 = vmatprep.mubr.bf16.mxu0 %v1367_v36  ;;  %740 = vmatprep.mubr.bf16.mxu1 %v1369_v37 }
  0x8b   : > { %677 = vmatmul.mubr.bf16.gmra.mxu0 %v1371_v38  ;;  %741 = vmatmul.mubr.bf16.gmra.mxu1 %v1372_v39 }
  0x8c   : > { %684 = vmatprep.mubr.bf16.mxu0 %v1373_v40  ;;  %748 = vmatprep.mubr.bf16.mxu1 %v1375_v41 }
  0x93   : > { %685 = vmatmul.mubr.bf16.gmra.mxu0 %v1377_v42  ;;  %749 = vmatmul.mubr.bf16.gmra.mxu1 %v1378_v43 }
  0x94   : > { %692 = vmatprep.mubr.bf16.mxu0 %v1379_v44  ;;  %756 = vmatprep.mubr.bf16.mxu1 %v1381_v45 }
  0x9b   : > { %693 = vmatmul.mubr.bf16.gmra.mxu0 %v1383_v46  ;;  %757 = vmatmul.mubr.bf16.gmra.mxu1 %v1384_v47 }
 0x123   : > { %v1130_v48 = vpop.f32.mrf.mxu0  ;;  %v1178_v49 = vpop.f32.mrf.mxu1 }
 0x125   : > { %v1131_v50 = vpop.f32.mrf.mxu0  ;;  %v1179_v52 = vpop.f32.mrf.mxu1 }
 0x126   : > { %v1132_v53 = vadd.f32 %v1131_v50, %v1130_v48  ;;  %v1180_v54 = vadd.f32 %v1179_v52, %v1178_v49 }
 0x127   : > { %v1133_v56 = vpop.f32.mrf.mxu0  ;;  %v1181_v57 = vpop.f32.mrf.mxu1 }
 0x128   : > { %v772_v58 = vmul.f32 %v1132_v53, %v1724_v51  ;;  %v788_v59 = vmul.f32 %v1180_v54, %v1724_v51 }
 0x129   : > { %v1134_v60 = vpop.f32.mrf.mxu0  ;;  %v1182_v61 = vpop.f32.mrf.mxu1 }
 0x12a   : > { %v811_v62 = vadd.f32 %v1729_v55, %v772_v58  ;;  %v827_v63 = vadd.f32 %v1729_v55, %v788_v59  ;;  %v1135_v0 = vadd.f32 %v1134_v60, %v1133_v56  ;;  %v1183_v1 = vadd.f32 %v1182_v61, %v1181_v57 }
 0x12b   : > { %v1136_v2 = vpop.f32.mrf.mxu0  ;;  %v1184_v3 = vpop.f32.mrf.mxu1 }
 0x12c   : > { %v843_v4 = vmax.f32 %v811_v62, 0.0  ;;  %v859_v5 = vmax.f32 %v827_v63, 0.0  ;;  %v773_v6 = vmul.f32 %v1135_v0, %v1724_v51  ;;  %v789_v7 = vmul.f32 %v1183_v1, %v1724_v51 }
 0x12d   : > { %v1137_v8 = vpop.f32.mrf.mxu0  ;;  %v1185_v9 = vpop.f32.mrf.mxu1 }
 0x12e   : > { %875 = vst [vmem:[%s1739_s8] sm:$0xff] %v843_v4  ;;  %891 = vst [vmem:[%s1739_s8 + $0x80] sm:$0xff] %v859_v5  ;;  %v812_v10 = vadd.f32 %v1729_v55, %v773_v6  ;;  %v828_v11 = vadd.f32 %v1729_v55, %v789_v7  ;;  %v1138_v12 = vadd.f32 %v1137_v8, %v1136_v2 }
 0x12f   : > { %v1186_v13 = vadd.f32 %v1185_v9, %v1184_v3  ;;  %v1139_v14 = vpop.f32.mrf.mxu0  ;;  %v1187_v15 = vpop.f32.mrf.mxu1 }
 0x130   : > { %v844_v16 = vmax.f32 %v812_v10, 0.0  ;;  %v860_v17 = vmax.f32 %v828_v11, 0.0  ;;  %v774_v18 = vmul.f32 %v1138_v12, %v1724_v51 }
 0x131   : > { %v790_v19 = vmul.f32 %v1186_v13, %v1724_v51  ;;  %v1140_v20 = vpop.f32.mrf.mxu0  ;;  %v1188_v21 = vpop.f32.mrf.mxu1 }
 0x132   : > { %876 = vst [vmem:[%s1739_s8 + $0x8] sm:$0xff] %v844_v16  ;;  %892 = vst [vmem:[%s1739_s8 + $0x88] sm:$0xff] %v860_v17  ;;  %v813_v22 = vadd.f32 %v1729_v55, %v774_v18  ;;  %v1141_v24 = vadd.f32 %v1140_v20, %v1139_v14  ;;  %v1189_v25 = vadd.f32 %v1188_v21, %v1187_v15 }
 0x133   : > { %v829_v23 = vadd.f32 %v1729_v55, %v790_v19  ;;  %v1142_v26 = vpop.f32.mrf.mxu0  ;;  %v1190_v27 = vpop.f32.mrf.mxu1 }
 0x134   : > { %v845_v28 = vmax.f32 %v813_v22, 0.0  ;;  %v775_v30 = vmul.f32 %v1141_v24, %v1724_v51  ;;  %v791_v31 = vmul.f32 %v1189_v25, %v1724_v51 }
 0x135   : > { %v861_v29 = vmax.f32 %v829_v23, 0.0  ;;  %v1143_v32 = vpop.f32.mrf.mxu0  ;;  %v1191_v33 = vpop.f32.mrf.mxu1 }
 0x136   : > { %877 = vst [vmem:[%s1739_s8 + $0x10] sm:$0xff] %v845_v28  ;;  %v814_v34 = vadd.f32 %v1729_v55, %v775_v30  ;;  %v830_v35 = vadd.f32 %v1729_v55, %v791_v31  ;;  %v1144_v36 = vadd.f32 %v1143_v32, %v1142_v26  ;;  %v1192_v37 = vadd.f32 %v1191_v33, %v1190_v27 }
 0x137   : > { %893 = vst [vmem:[%s1739_s8 + $0x90] sm:$0xff] %v861_v29  ;;  %v1145_v38 = vpop.f32.mrf.mxu0  ;;  %v1193_v39 = vpop.f32.mrf.mxu1 }
 0x138   : > { %v846_v40 = vmax.f32 %v814_v34, 0.0  ;;  %v862_v41 = vmax.f32 %v830_v35, 0.0  ;;  %v776_v42 = vmul.f32 %v1144_v36, %v1724_v51  ;;  %v792_v43 = vmul.f32 %v1192_v37, %v1724_v51 }
 0x139   : > { %v1146_v44 = vpop.f32.mrf.mxu0  ;;  %v1194_v45 = vpop.f32.mrf.mxu1 }
 0x13a   : > { %878 = vst [vmem:[%s1739_s8 + $0x18] sm:$0xff] %v846_v40  ;;  %894 = vst [vmem:[%s1739_s8 + $0x98] sm:$0xff] %v862_v41  ;;  %v815_v46 = vadd.f32 %v1729_v55, %v776_v42  ;;  %v831_v47 = vadd.f32 %v1729_v55, %v792_v43  ;;  %v1147_v48 = vadd.f32 %v1146_v44, %v1145_v38 }
 0x13b   : > { %v1195_v49 = vadd.f32 %v1194_v45, %v1193_v39  ;;  %v1148_v50 = vpop.f32.mrf.mxu0  ;;  %v1196_v52 = vpop.f32.mrf.mxu1 }
 0x13c   : > { %v847_v53 = vmax.f32 %v815_v46, 0.0  ;;  %v863_v54 = vmax.f32 %v831_v47, 0.0  ;;  %v777_v56 = vmul.f32 %v1147_v48, %v1724_v51 }
 0x13d   : > { %v793_v57 = vmul.f32 %v1195_v49, %v1724_v51  ;;  %v1149_v58 = vpop.f32.mrf.mxu0  ;;  %v1197_v59 = vpop.f32.mrf.mxu1 }
 0x13e   : > { %879 = vst [vmem:[%s1739_s8 + $0x20] sm:$0xff] %v847_v53  ;;  %895 = vst [vmem:[%s1739_s8 + $0xa0] sm:$0xff] %v863_v54  ;;  %v816_v60 = vadd.f32 %v1729_v55, %v777_v56  ;;  %v1150_v62 = vadd.f32 %v1149_v58, %v1148_v50  ;;  %v1198_v63 = vadd.f32 %v1197_v59, %v1196_v52 }
 0x13f   : > { %v832_v61 = vadd.f32 %v1729_v55, %v793_v57  ;;  %v1151_v0 = vpop.f32.mrf.mxu0  ;;  %v1199_v1 = vpop.f32.mrf.mxu1 }
 0x140   : > { %v848_v2 = vmax.f32 %v816_v60, 0.0  ;;  %v778_v4 = vmul.f32 %v1150_v62, %v1724_v51  ;;  %v794_v5 = vmul.f32 %v1198_v63, %v1724_v51 }
 0x141   : > { %v864_v3 = vmax.f32 %v832_v61, 0.0  ;;  %v1152_v6 = vpop.f32.mrf.mxu0  ;;  %v1200_v7 = vpop.f32.mrf.mxu1 }
 0x142   : > { %880 = vst [vmem:[%s1739_s8 + $0x28] sm:$0xff] %v848_v2  ;;  %v817_v8 = vadd.f32 %v1729_v55, %v778_v4  ;;  %v833_v9 = vadd.f32 %v1729_v55, %v794_v5  ;;  %v1153_v10 = vadd.f32 %v1152_v6, %v1151_v0  ;;  %v1201_v11 = vadd.f32 %v1200_v7, %v1199_v1 }
 0x143   : > { %896 = vst [vmem:[%s1739_s8 + $0xa8] sm:$0xff] %v864_v3  ;;  %v1154_v12 = vpop.f32.mrf.mxu0  ;;  %v1202_v13 = vpop.f32.mrf.mxu1 }
 0x144   : > { %v849_v14 = vmax.f32 %v817_v8, 0.0  ;;  %v865_v15 = vmax.f32 %v833_v9, 0.0  ;;  %v779_v16 = vmul.f32 %v1153_v10, %v1724_v51  ;;  %v795_v17 = vmul.f32 %v1201_v11, %v1724_v51 }
 0x145   : > { %v1155_v18 = vpop.f32.mrf.mxu0  ;;  %v1203_v19 = vpop.f32.mrf.mxu1 }
 0x146   : > { %881 = vst [vmem:[%s1739_s8 + $0x30] sm:$0xff] %v849_v14  ;;  %897 = vst [vmem:[%s1739_s8 + $0xb0] sm:$0xff] %v865_v15  ;;  %v818_v20 = vadd.f32 %v1729_v55, %v779_v16  ;;  %v834_v21 = vadd.f32 %v1729_v55, %v795_v17  ;;  %v1156_v22 = vadd.f32 %v1155_v18, %v1154_v12 }
 0x147   : > { %v1204_v23 = vadd.f32 %v1203_v19, %v1202_v13  ;;  %v1157_v24 = vpop.f32.mrf.mxu0  ;;  %v1205_v25 = vpop.f32.mrf.mxu1 }
 0x148   : > { %v850_v26 = vmax.f32 %v818_v20, 0.0  ;;  %v866_v27 = vmax.f32 %v834_v21, 0.0  ;;  %v780_v28 = vmul.f32 %v1156_v22, %v1724_v51 }
 0x149   : > { %v796_v29 = vmul.f32 %v1204_v23, %v1724_v51  ;;  %v1158_v30 = vpop.f32.mrf.mxu0  ;;  %v1206_v31 = vpop.f32.mrf.mxu1 }
 0x14a   : > { %882 = vst [vmem:[%s1739_s8 + $0x38] sm:$0xff] %v850_v26  ;;  %898 = vst [vmem:[%s1739_s8 + $0xb8] sm:$0xff] %v866_v27  ;;  %v819_v32 = vadd.f32 %v1729_v55, %v780_v28  ;;  %v1159_v34 = vadd.f32 %v1158_v30, %v1157_v24  ;;  %v1207_v35 = vadd.f32 %v1206_v31, %v1205_v25 }
 0x14b   : > { %v835_v33 = vadd.f32 %v1729_v55, %v796_v29  ;;  %v1160_v36 = vpop.f32.mrf.mxu0  ;;  %v1208_v37 = vpop.f32.mrf.mxu1 }
 0x14c   : > { %v851_v38 = vmax.f32 %v819_v32, 0.0  ;;  %v781_v40 = vmul.f32 %v1159_v34, %v1724_v51  ;;  %v797_v41 = vmul.f32 %v1207_v35, %v1724_v51 }
 0x14d   : > { %v867_v39 = vmax.f32 %v835_v33, 0.0  ;;  %v1161_v42 = vpop.f32.mrf.mxu0  ;;  %v1209_v43 = vpop.f32.mrf.mxu1 }
 0x14e   : > { %883 = vst [vmem:[%s1739_s8 + $0x40] sm:$0xff] %v851_v38  ;;  %v820_v44 = vadd.f32 %v1729_v55, %v781_v40  ;;  %v836_v45 = vadd.f32 %v1729_v55, %v797_v41  ;;  %v1162_v46 = vadd.f32 %v1161_v42, %v1160_v36  ;;  %v1210_v47 = vadd.f32 %v1209_v43, %v1208_v37 }
 0x14f   : > { %899 = vst [vmem:[%s1739_s8 + $0xc0] sm:$0xff] %v867_v39  ;;  %v1163_v48 = vpop.f32.mrf.mxu0  ;;  %v1211_v49 = vpop.f32.mrf.mxu1 }
 0x150   : > { %v852_v50 = vmax.f32 %v820_v44, 0.0  ;;  %v868_v52 = vmax.f32 %v836_v45, 0.0  ;;  %v782_v53 = vmul.f32 %v1162_v46, %v1724_v51  ;;  %v798_v54 = vmul.f32 %v1210_v47, %v1724_v51 }
 0x151   : > { %v1164_v56 = vpop.f32.mrf.mxu0  ;;  %v1212_v57 = vpop.f32.mrf.mxu1 }
 0x152   : > { %884 = vst [vmem:[%s1739_s8 + $0x48] sm:$0xff] %v852_v50  ;;  %900 = vst [vmem:[%s1739_s8 + $0xc8] sm:$0xff] %v868_v52  ;;  %v821_v58 = vadd.f32 %v1729_v55, %v782_v53  ;;  %v837_v59 = vadd.f32 %v1729_v55, %v798_v54  ;;  %v1165_v60 = vadd.f32 %v1164_v56, %v1163_v48 }
 0x153   : > { %v1213_v61 = vadd.f32 %v1212_v57, %v1211_v49  ;;  %v1166_v62 = vpop.f32.mrf.mxu0  ;;  %v1214_v63 = vpop.f32.mrf.mxu1 }
 0x154   : > { %v853_v0 = vmax.f32 %v821_v58, 0.0  ;;  %v869_v1 = vmax.f32 %v837_v59, 0.0  ;;  %v783_v2 = vmul.f32 %v1165_v60, %v1724_v51 }
 0x155   : > { %v799_v3 = vmul.f32 %v1213_v61, %v1724_v51  ;;  %v1167_v4 = vpop.f32.mrf.mxu0  ;;  %v1215_v5 = vpop.f32.mrf.mxu1 }
 0x156   : > { %885 = vst [vmem:[%s1739_s8 + $0x50] sm:$0xff] %v853_v0  ;;  %901 = vst [vmem:[%s1739_s8 + $0xd0] sm:$0xff] %v869_v1  ;;  %v822_v6 = vadd.f32 %v1729_v55, %v783_v2  ;;  %v1168_v8 = vadd.f32 %v1167_v4, %v1166_v62  ;;  %v1216_v9 = vadd.f32 %v1215_v5, %v1214_v63 }
 0x157   : > { %v838_v7 = vadd.f32 %v1729_v55, %v799_v3  ;;  %v1169_v10 = vpop.f32.mrf.mxu0  ;;  %v1217_v11 = vpop.f32.mrf.mxu1 }
 0x158   : > { %v854_v12 = vmax.f32 %v822_v6, 0.0  ;;  %v784_v14 = vmul.f32 %v1168_v8, %v1724_v51  ;;  %v800_v15 = vmul.f32 %v1216_v9, %v1724_v51 }
 0x159   : > { %v870_v13 = vmax.f32 %v838_v7, 0.0  ;;  %v1170_v16 = vpop.f32.mrf.mxu0  ;;  %v1218_v17 = vpop.f32.mrf.mxu1 }
 0x15a   : > { %886 = vst [vmem:[%s1739_s8 + $0x58] sm:$0xff] %v854_v12  ;;  %v823_v18 = vadd.f32 %v1729_v55, %v784_v14  ;;  %v839_v19 = vadd.f32 %v1729_v55, %v800_v15  ;;  %v1171_v20 = vadd.f32 %v1170_v16, %v1169_v10  ;;  %v1219_v21 = vadd.f32 %v1218_v17, %v1217_v11 }
 0x15b   : > { %902 = vst [vmem:[%s1739_s8 + $0xd8] sm:$0xff] %v870_v13  ;;  %v1172_v22 = vpop.f32.mrf.mxu0  ;;  %v1220_v23 = vpop.f32.mrf.mxu1 }
 0x15c   : > { %v855_v24 = vmax.f32 %v823_v18, 0.0  ;;  %v871_v25 = vmax.f32 %v839_v19, 0.0  ;;  %v785_v26 = vmul.f32 %v1171_v20, %v1724_v51  ;;  %v801_v27 = vmul.f32 %v1219_v21, %v1724_v51 }
 0x15d   : > { %v1173_v28 = vpop.f32.mrf.mxu0  ;;  %v1221_v29 = vpop.f32.mrf.mxu1 }
 0x15e   : > { %887 = vst [vmem:[%s1739_s8 + $0x60] sm:$0xff] %v855_v24  ;;  %903 = vst [vmem:[%s1739_s8 + $0xe0] sm:$0xff] %v871_v25  ;;  %v824_v30 = vadd.f32 %v1729_v55, %v785_v26  ;;  %v840_v31 = vadd.f32 %v1729_v55, %v801_v27  ;;  %v1174_v32 = vadd.f32 %v1173_v28, %v1172_v22 }
 0x15f   : > { %v1222_v33 = vadd.f32 %v1221_v29, %v1220_v23  ;;  %v1175_v34 = vpop.f32.mrf.mxu0  ;;  %v1223_v35 = vpop.f32.mrf.mxu1 }
 0x160   : > { %v856_v36 = vmax.f32 %v824_v30, 0.0  ;;  %v872_v37 = vmax.f32 %v840_v31, 0.0  ;;  %v786_v38 = vmul.f32 %v1174_v32, %v1724_v51 }
 0x161   : > { %v802_v39 = vmul.f32 %v1222_v33, %v1724_v51  ;;  %v1176_v40 = vpop.f32.mrf.mxu0  ;;  %v1224_v41 = vpop.f32.mrf.mxu1 }
 0x162   : > { %888 = vst [vmem:[%s1739_s8 + $0x68] sm:$0xff] %v856_v36  ;;  %904 = vst [vmem:[%s1739_s8 + $0xe8] sm:$0xff] %v872_v37  ;;  %v825_v42 = vadd.f32 %v1729_v55, %v786_v38  ;;  %v1177_v44 = vadd.f32 %v1176_v40, %v1175_v34  ;;  %v1225_v45 = vadd.f32 %v1224_v41, %v1223_v35 }
 0x163   : > { %v841_v43 = vadd.f32 %v1729_v55, %v802_v39 }
 0x164   : > { %v857_v46 = vmax.f32 %v825_v42, 0.0  ;;  %v787_v48 = vmul.f32 %v1177_v44, %v1724_v51  ;;  %v803_v49 = vmul.f32 %v1225_v45, %v1724_v51 }
 0x165   : > { %v873_v47 = vmax.f32 %v841_v43, 0.0 }
 0x166   : > { %889 = vst [vmem:[%s1739_s8 + $0x70] sm:$0xff] %v857_v46  ;;  %v826_v50 = vadd.f32 %v1729_v55, %v787_v48  ;;  %v842_v52 = vadd.f32 %v1729_v55, %v803_v49 }
 0x167   : > { %905 = vst [vmem:[%s1739_s8 + $0xf0] sm:$0xff] %v873_v47 }
 0x168   : > { %v858_v51 = vmax.f32 %v826_v50, 0.0  ;;  %v874_v53 = vmax.f32 %v842_v52, 0.0 }
 0x16a   : > { %890 = vst [vmem:[%s1739_s8 + $0x78] sm:$0xff] %v858_v51  ;;  %906 = vst [vmem:[%s1739_s8 + $0xf8] sm:$0xff] %v874_v53 }
 0x16b   : > { %1452 = shalt.err (!%p1449_p3)
}
 0x16c   : > { %s1453_s30 = scalar_lea.hbm %s1834_s11, 4096  ;;  %s1457_s25 = scalar_lea.hbm %s1889_s4, 32768 }
 0x16d   : > { %p1454_p5 = scmp.ne.s32.totalorder %s1834_s11, %s1453_s30  ;;  %p1458_p6 = scmp.lt.s32.totalorder %s1834_s11, %s1889_s4 }
 0x16e   : > { %p1459_p11 = scmp.lt.s32.totalorder %s1457_s25, %s1453_s30 }
 0x16f   : > { %p1455_p7 = pnand %p1454_p5, %p1902_p4 }
 0x170   : > { %p1460_p10 = por %p1459_p11, %p1458_p6 }
 0x171   : > { %p1456_p9 = pneg %p1455_p7 }
 0x173   : > { %p1461_p1 = pnand %p1460_p10, %p1456_p9 }
 0x175   : > { %1464 = shalt.err (!%p1461_p1)
}
 0x176   : > { %s1532_s8 = smov 128   ;;  %s1533_s9 = smov 8  }
 0x177   : > { %1248 = dma.vmem_to_hbm [thread:$0]  (%p1902_p4), %s1836_s24, 4096, %s1834_s11, %s908_s18, %s1532_s8, %s1532_s8, %s1533_s9  }
 0x178 PF: > { %p1265_p8 = scmp.ge.s32.totalorder %s1523_s20, 2  ;;  %s937_s10 = sand.u32 1, %s1503_s15  }
 0x179   : > { %p1903_p12 = scmp.ne.s32.totalorder %s1895_s26, 0  ;;  %s938_s14 = scalar_lea.sflag [#allocation4], %s937_s10 }
 0x17b   : > { %p1259_p13 = pnand %p1265_p8, %p1903_p12 }
 0x17d   : > { %p1260_p0 = pneg %p1259_p13 }
 0x17f   : > { %1498 = dma.done.wait (%p1260_p0), %s938_s14, 4096  }
 0x180   : > { %1500 = vsyncadd (%p1260_p0), %s938_s14, 4294963200  ;;  %s21_s20 = sadd.s32 1, %s1523_s20   ;;  %s1904_s15 = smov %s1507_s16 }
 0x181   : > { %p18_p2 = scmp.ge.s32.totalorder %s21_s20, 10   ;;  %s1905_s16 = smov %s1511_s17 }
 0x182   : > { %s1906_s17 = smov %s1654_s28  ;;  %s1907_s18 = smov %s1519_s19 }
 0x183   : > { %s1908_s19 = smov %s1910_s5  ;;  %20 = sbr.rel (!%p18_p2) target bundleno = 9 (0x9), region = 92 }
 0x188   :  { %943 = vsyncpa [#allocation3], 1 }
 0x189   :  { %945 = vsyncpa [#allocation3 + $0x1], 1 }
 0x18a   :  { %946 = vsyncpa [#allocation6], 1 }
 0x18b   :  { %947 = vsyncpa [#allocation4], 1 }
 0x18c   :  { %949 = vsyncpa [#allocation4 + $0x1], 1 }

</bundles_post_ra>
